<compile_context>
chip_gen: v5e
topology: v5e:2x2
jax: 0.10.0
libtpu: 0.0.40
codegen_flags: <defaults>
</compile_context>

<pallas_src>
import jax
import jax.numpy as jnp
from jax.experimental import pallas as pl
from jax.experimental.pallas import tpu as pltpu

IN_FEATURES = 10
OUT_FEATURES = 256
BATCH = 1


def _linear_add_kernel(x_ref, w_ref, b_ref, other_ref, o_ref):
    """
    x_ref     : (1, K) f32 in SMEM (scalars)
    w_ref     : (K, N) f32 in VMEM (weight, already transposed to K x N)
    b_ref     : (1, N) f32 in VMEM
    other_ref : (1, N) f32 in VMEM
    o_ref     : (1, N) f32 in VMEM
    """
    K = w_ref.shape[0]
    # Scalar-broadcast VPU path: K unrolled scalar*vector FMAs over the
    # (1, 256) row (2 lane-vregs). Avoids MXU fill/drain for a 1-row matmul.
    acc = x_ref[0, 0] * w_ref[0:1, :]
    for k in range(1, K):
        acc = acc + x_ref[0, k] * w_ref[k:k + 1, :]
    # Match PyTorch evaluation order: (x @ W^T + b) + other.
    o_ref[...] = ((acc + b_ref[...]) + other_ref[...]).astype(o_ref.dtype)


def linear_add(x, w_kn, b_1n, other_1n):
    """x: (1, K) f32, w_kn: (K, N) f32 (pre-transposed), b_1n/other_1n: (1, N) f32."""
    B, K = x.shape
    Kw, N = w_kn.shape
    assert K == Kw
    assert B == 1  # spec shape; B>1 would want an MXU/grid path (see review)
    assert b_1n.shape == (1, N) and other_1n.shape == (1, N)

    cost = pl.CostEstimate(
        flops=2 * B * K * N + 2 * B * N,
        transcendentals=0,
        bytes_accessed=(B * K + K * N + N + N + B * N) * 4,
    )

    return pl.pallas_call(
        _linear_add_kernel,
        out_shape=jax.ShapeDtypeStruct((B, N), jnp.float32),
        in_specs=[
            pl.BlockSpec(memory_space=pltpu.MemorySpace.SMEM),   # x  (10 scalars)
            pl.BlockSpec(memory_space=pltpu.MemorySpace.VMEM),   # W^T (K, N)
            pl.BlockSpec(memory_space=pltpu.MemorySpace.VMEM),   # bias (1, N)
            pl.BlockSpec(memory_space=pltpu.MemorySpace.VMEM),   # other (1, N)
        ],
        out_specs=pl.BlockSpec(memory_space=pltpu.MemorySpace.VMEM),
        cost_estimate=cost,
    )(x, w_kn, b_1n, other_1n)


if __name__ == "__main__":
    key = jax.random.PRNGKey(0)
    k_x, k_w, k_b, k_o = jax.random.split(key, 4)

    # ---- parameter init (done ONCE, off the per-call path) ----------------
    # Linear(10, 256): uniform(-1/sqrt(K), 1/sqrt(K)), PyTorch layout (out, in)
    bound = 1.0 / (IN_FEATURES ** 0.5)
    w = jax.random.uniform(k_w, (OUT_FEATURES, IN_FEATURES), jnp.float32,
                           minval=-bound, maxval=bound)
    b = jax.random.uniform(k_b, (OUT_FEATURES,), jnp.float32,
                           minval=-bound, maxval=bound)
    # Pre-transpose / pre-reshape at init so the forward call does zero
    # wrapper-side array ops.
    w_kn = jnp.asarray(w.T)                              # (K, N)
    b_1n = jnp.reshape(b, (1, OUT_FEATURES))             # (1, N)

    # ---- inputs ------------------------------------------------------------
    x = jax.random.normal(k_x, (BATCH, IN_FEATURES), jnp.float32)
    other = jax.random.normal(k_o, (1, OUT_FEATURES), jnp.float32)

    out = linear_add(x, w_kn, b_1n, other)
    out = jax.block_until_ready(out)

    # Reference check in plain JAX
    ref = (x @ w_kn + b_1n) + other
    assert out.shape == (BATCH, OUT_FEATURES)
    assert jnp.allclose(out, ref, atol=1e-5, rtol=1e-5)

    print("KERNEL_OK")
</pallas_src>

<mosaic_0001>
module attributes {stable_mosaic.version = 11 : i64} {
  func.func @_linear_add_kernel(%arg0: memref<1x10xf32, #tpu.memory_space<smem>>, %arg1: memref<10x256xf32, #tpu.memory_space<vmem>>, %arg2: memref<1x256xf32, #tpu.memory_space<vmem>>, %arg3: memref<1x256xf32, #tpu.memory_space<vmem>>, %arg4: memref<1x256xf32, #tpu.memory_space<vmem>>) attributes {dimension_semantics = [], scalar_prefetch = 0 : i64, scratch_operands = 0 : i64, tpu.core_type = #tpu.core_type<tc>} {
    %c0 = arith.constant 0 : index
    %c0_0 = arith.constant 0 : index
    %0 = memref.load %arg0[%c0, %c0_0] : memref<1x10xf32, #tpu.memory_space<smem>>
    %c0_1 = arith.constant 0 : index
    %c0_2 = arith.constant 0 : index
    %1 = vector.load %arg1[%c0_1, %c0_2] : memref<10x256xf32, #tpu.memory_space<vmem>>, vector<1x256xf32>
    %2 = vector.broadcast %0 : f32 to vector<1x256xf32>
    %3 = arith.mulf %2, %1 : vector<1x256xf32>
    %c0_3 = arith.constant 0 : index
    %c1 = arith.constant 1 : index
    %4 = memref.load %arg0[%c0_3, %c1] : memref<1x10xf32, #tpu.memory_space<smem>>
    %c1_4 = arith.constant 1 : index
    %c0_5 = arith.constant 0 : index
    %5 = vector.load %arg1[%c1_4, %c0_5] : memref<10x256xf32, #tpu.memory_space<vmem>>, vector<1x256xf32>
    %6 = vector.broadcast %4 : f32 to vector<1x256xf32>
    %7 = arith.mulf %6, %5 : vector<1x256xf32>
    %8 = arith.addf %3, %7 : vector<1x256xf32>
    %c0_6 = arith.constant 0 : index
    %c2 = arith.constant 2 : index
    %9 = memref.load %arg0[%c0_6, %c2] : memref<1x10xf32, #tpu.memory_space<smem>>
    %c2_7 = arith.constant 2 : index
    %c0_8 = arith.constant 0 : index
    %10 = vector.load %arg1[%c2_7, %c0_8] : memref<10x256xf32, #tpu.memory_space<vmem>>, vector<1x256xf32>
    %11 = vector.broadcast %9 : f32 to vector<1x256xf32>
    %12 = arith.mulf %11, %10 : vector<1x256xf32>
    %13 = arith.addf %8, %12 : vector<1x256xf32>
    %c0_9 = arith.constant 0 : index
    %c3 = arith.constant 3 : index
    %14 = memref.load %arg0[%c0_9, %c3] : memref<1x10xf32, #tpu.memory_space<smem>>
    %c3_10 = arith.constant 3 : index
    %c0_11 = arith.constant 0 : index
    %15 = vector.load %arg1[%c3_10, %c0_11] : memref<10x256xf32, #tpu.memory_space<vmem>>, vector<1x256xf32>
    %16 = vector.broadcast %14 : f32 to vector<1x256xf32>
    %17 = arith.mulf %16, %15 : vector<1x256xf32>
    %18 = arith.addf %13, %17 : vector<1x256xf32>
    %c0_12 = arith.constant 0 : index
    %c4 = arith.constant 4 : index
    %19 = memref.load %arg0[%c0_12, %c4] : memref<1x10xf32, #tpu.memory_space<smem>>
    %c4_13 = arith.constant 4 : index
    %c0_14 = arith.constant 0 : index
    %20 = vector.load %arg1[%c4_13, %c0_14] : memref<10x256xf32, #tpu.memory_space<vmem>>, vector<1x256xf32>
    %21 = vector.broadcast %19 : f32 to vector<1x256xf32>
    %22 = arith.mulf %21, %20 : vector<1x256xf32>
    %23 = arith.addf %18, %22 : vector<1x256xf32>
    %c0_15 = arith.constant 0 : index
    %c5 = arith.constant 5 : index
    %24 = memref.load %arg0[%c0_15, %c5] : memref<1x10xf32, #tpu.memory_space<smem>>
    %c5_16 = arith.constant 5 : index
    %c0_17 = arith.constant 0 : index
    %25 = vector.load %arg1[%c5_16, %c0_17] : memref<10x256xf32, #tpu.memory_space<vmem>>, vector<1x256xf32>
    %26 = vector.broadcast %24 : f32 to vector<1x256xf32>
    %27 = arith.mulf %26, %25 : vector<1x256xf32>
    %28 = arith.addf %23, %27 : vector<1x256xf32>
    %c0_18 = arith.constant 0 : index
    %c6 = arith.constant 6 : index
    %29 = memref.load %arg0[%c0_18, %c6] : memref<1x10xf32, #tpu.memory_space<smem>>
    %c6_19 = arith.constant 6 : index
    %c0_20 = arith.constant 0 : index
    %30 = vector.load %arg1[%c6_19, %c0_20] : memref<10x256xf32, #tpu.memory_space<vmem>>, vector<1x256xf32>
    %31 = vector.broadcast %29 : f32 to vector<1x256xf32>
    %32 = arith.mulf %31, %30 : vector<1x256xf32>
    %33 = arith.addf %28, %32 : vector<1x256xf32>
    %c0_21 = arith.constant 0 : index
    %c7 = arith.constant 7 : index
    %34 = memref.load %arg0[%c0_21, %c7] : memref<1x10xf32, #tpu.memory_space<smem>>
    %c7_22 = arith.constant 7 : index
    %c0_23 = arith.constant 0 : index
    %35 = vector.load %arg1[%c7_22, %c0_23] : memref<10x256xf32, #tpu.memory_space<vmem>>, vector<1x256xf32>
    %36 = vector.broadcast %34 : f32 to vector<1x256xf32>
    %37 = arith.mulf %36, %35 : vector<1x256xf32>
    %38 = arith.addf %33, %37 : vector<1x256xf32>
    %c0_24 = arith.constant 0 : index
    %c8 = arith.constant 8 : index
    %39 = memref.load %arg0[%c0_24, %c8] : memref<1x10xf32, #tpu.memory_space<smem>>
    %c8_25 = arith.constant 8 : index
    %c0_26 = arith.constant 0 : index
    %40 = vector.load %arg1[%c8_25, %c0_26] : memref<10x256xf32, #tpu.memory_space<vmem>>, vector<1x256xf32>
    %41 = vector.broadcast %39 : f32 to vector<1x256xf32>
    %42 = arith.mulf %41, %40 : vector<1x256xf32>
    %43 = arith.addf %38, %42 : vector<1x256xf32>
    %c0_27 = arith.constant 0 : index
    %c9 = arith.constant 9 : index
    %44 = memref.load %arg0[%c0_27, %c9] : memref<1x10xf32, #tpu.memory_space<smem>>
    %c9_28 = arith.constant 9 : index
    %c0_29 = arith.constant 0 : index
    %45 = vector.load %arg1[%c9_28, %c0_29] : memref<10x256xf32, #tpu.memory_space<vmem>>, vector<1x256xf32>
    %46 = vector.broadcast %44 : f32 to vector<1x256xf32>
    %47 = arith.mulf %46, %45 : vector<1x256xf32>
    %48 = arith.addf %43, %47 : vector<1x256xf32>
    %c0_30 = arith.constant 0 : index
    %c0_31 = arith.constant 0 : index
    %49 = vector.load %arg2[%c0_30, %c0_31] : memref<1x256xf32, #tpu.memory_space<vmem>>, vector<1x256xf32>
    %50 = arith.addf %48, %49 : vector<1x256xf32>
    %c0_32 = arith.constant 0 : index
    %c0_33 = arith.constant 0 : index
    %51 = vector.load %arg3[%c0_32, %c0_33] : memref<1x256xf32, #tpu.memory_space<vmem>>, vector<1x256xf32>
    %52 = arith.addf %50, %51 : vector<1x256xf32>
    %c0_34 = arith.constant 0 : index
    %c0_35 = arith.constant 0 : index
    %53 = vector.load %arg4[%c0_34, %c0_35] : memref<1x256xf32, #tpu.memory_space<vmem>>, vector<1x256xf32>
    tpu.vector_store %arg4[%c0_34, %c0_35], %52 {strides = array<i32>} : memref<1x256xf32, #tpu.memory_space<vmem>>, vector<1x256xf32>,
    return
  }
}

</mosaic_0001>

<bundles_post_ra>
// kernel: tpu_custom_call.1
= control target key start
LH: loop header
LB: loop body
LE: loop exit
PB: predicated region body
PF: predicated region fallthrough
CT: control target
= control target key end

     0   :  { %9 = vsyncpa [#allocation5], 0  ;;  %s300_s0 = inlined_call_operand.hbm [shape: f32[1,10], index: 0, kind: input, shape index: {}]   ;;  %s301_s1 = inlined_call_operand.hbm [shape: f32[10,256], index: 1, kind: input, shape index: {}]   ;;  %s302_s2 = inlined_call_operand.hbm [shape: f32[1,256], index: 2, kind: input, shape index: {}]   ;;  %s303_s3 = inlined_call_operand.vmem [shape: f32[1,256], index: 3, kind: input, shape index: {}]   ;;  %s304_s4 = inlined_call_operand.hbm [shape: f32[1,256], index: 4, kind: output, shape index: {}]  }
   0x1   :  { %10 = vsyncpa [#allocation3], 0 }
   0x2   :  { %11 = vsyncpa [#allocation8], 0 }
   0x3   :  { %12 = vsyncpa [#allocation4], 0  ;;  %s18_s17 = sshll.u32 %s300_s0, 4  ;;  %s26_s20 = sshll.u32 %s301_s1, 4  ;;  %s19_s17 = int_to_ptr.hbm [resolvable:$true] %s18_s17  ;;  %s27_s20 = int_to_ptr.hbm [resolvable:$true] %s26_s20 }
   0x4   :  { %s254_s21 = smov [#allocation2]   ;;  %s255_s22 = smov [#allocation6]  }
   0x5   :  { %21 = dma.hbm_to_smem %s19_s17, 16, %s254_s21, [#allocation5]  }
   0x6   :  { %s28_s23 = sshll.u32 %s255_s22, 4  ;;  %s256_s24 = smov 256   ;;  %s29_s23 = int_to_ptr.vmem [resolvable:$true] %s28_s23 }
   0x7   :  { %s257_s25 = smov 16   ;;  %s40_s28 = sshll.u32 %s302_s2, 4  ;;  %s41_s28 = int_to_ptr.hbm [resolvable:$true] %s40_s28 }
   0x8   :  { %34 = dma.hbm_to_vmem [thread:$0]  %s27_s20, 512, %s29_s23, [#allocation3], %s256_s24, %s256_s24, %s257_s25  }
   0x9   :  { %s258_s0 = smov [#allocation7]  }
   0xa   :  { %s42_s29 = sshll.u32 %s258_s0, 4  ;;  %s43_s29 = int_to_ptr.vmem [resolvable:$true] %s42_s29 }
   0xb   :  { %45 = dma.hbm_to_vmem [thread:$0]  %s41_s28, 32, %s43_s29, [#allocation8]  }
   0xc   :  { %246 = dma.done.wait [#allocation5], 16  }
   0xd   :  { %247 = vsyncadd [#allocation5], 4294967280 }
   0xe   :  { %248 = dma.done.wait [#allocation3], 512  }
   0xf   :  { %249 = vsyncadd [#allocation3], 4294966784 }
  0x10   :  { %250 = dma.done.wait [#allocation8], 32  }
  0x11   :  { %251 = vsyncadd [#allocation8], 4294967264 }
  0x12   :  { %60 = sfence }
  0x13   :  { %s61_s1 = sld [smem:[#allocation2]]  ;;  %v62_v0 = vld [vmem:[#allocation6] ss:$8 sm:$0x3]  ;;  %v123_v39 = vlaneseq  ;;  %s259_s14 = smov [#allocation9]  }
  0x14   :  { %s147_s30 = sld [smem:[#allocation2 + $0x1]]  ;;  %v67_v1 = vld [vmem:[#allocation6 + $0x1] ss:$8 sm:$0x3]  ;;  %s133_s15 = sshll.u32 %s259_s14, 4  ;;  %s134_s15 = int_to_ptr.vmem [resolvable:$true] %s133_s15 }
  0x15   :  { %s148_s5 = sld [smem:[#allocation2 + $0x2]]  ;;  %v73_v3 = vld [vmem:[#allocation6 + $0x2] ss:$8 sm:$0x3]  ;;  %v119_v38 = vld [vmem:[#allocation7] sm:$0x3] }
  0x16   :  { %s149_s6 = sld [smem:[#allocation2 + $0x3]]  ;;  %v79_v6 = vld [vmem:[#allocation6 + $0x3] ss:$8 sm:$0x3]  ;;  %v121_v41 = vld [vmem:[%s303_s3] sm:$0x3] }
  0x17   :  { %s150_s7 = sld [smem:[#allocation2 + $0x4]]  ;;  %v85_v11 = vld [vmem:[#allocation6 + $0x4] ss:$8 sm:$0x3]  ;;  %s135_s18 = sshll.u32 %s304_s4, 4  ;;  %vm125_vm0 = vcmp.lt.s32.totalorder %v123_v39, 256  ;;  %s136_s18 = int_to_ptr.hbm [resolvable:$true] %s135_s18 }
  0x18   :  { %s151_s2 = sld [smem:[#allocation2 + $0x5]]  ;;  %v91_v15 = vld [vmem:[#allocation6 + $0x5] ss:$8 sm:$0x3] }
  0x19   :  { %v63_v2 = vstv %s61_s1  ;;  %s152_s8 = sld [smem:[#allocation2 + $0x6]]  ;;  %v97_v19 = vld [vmem:[#allocation6 + $0x6] ss:$8 sm:$0x3] }
  0x1a   :  { %v64_v4 = vmul.f32 %v63_v2, %v62_v0  ;;  %v68_v5 = vstv %s147_s30  ;;  %s153_s9 = sld [smem:[#allocation2 + $0x7]]  ;;  %v103_v23 = vld [vmem:[#allocation6 + $0x7] ss:$8 sm:$0x3] }
  0x1b   :  { %v69_v7 = vmul.f32 %v68_v5, %v67_v1  ;;  %v74_v8 = vstv %s148_s5  ;;  %s154_s10 = sld [smem:[#allocation2 + $0x8]]  ;;  %v109_v27 = vld [vmem:[#allocation6 + $0x10] ss:$8 sm:$0x3] }
  0x1c   :  { %v75_v9 = vmul.f32 %v74_v8, %v73_v3  ;;  %v80_v10 = vstv %s149_s6  ;;  %s155_s11 = sld [smem:[#allocation2 + $0x9]]  ;;  %v115_v31 = vld [vmem:[#allocation6 + $0x11] ss:$8 sm:$0x3] }
  0x1d   :  { %v70_v12 = vadd.f32 %v69_v7, %v64_v4  ;;  %v81_v13 = vmul.f32 %v80_v10, %v79_v6  ;;  %v86_v14 = vstv %s150_s7 }
  0x1e   :  { %v92_v16 = vstv %s151_s2  ;;  %v87_v18 = vmul.f32 %v86_v14, %v85_v11 }
  0x1f   :  { %v76_v17 = vadd.f32 %v75_v9, %v70_v12  ;;  %v98_v20 = vstv %s152_s8  ;;  %v93_v22 = vmul.f32 %v92_v16, %v91_v15 }
  0x20   :  { %v104_v24 = vstv %s153_s9  ;;  %v99_v26 = vmul.f32 %v98_v20, %v97_v19 }
  0x21   :  { %v82_v21 = vadd.f32 %v81_v13, %v76_v17  ;;  %v110_v28 = vstv %s154_s10  ;;  %v105_v30 = vmul.f32 %v104_v24, %v103_v23 }
  0x22   :  { %v116_v32 = vstv %s155_s11  ;;  %v111_v34 = vmul.f32 %v110_v28, %v109_v27 }
  0x23   :  { %v88_v25 = vadd.f32 %v87_v18, %v82_v21  ;;  %v117_v36 = vmul.f32 %v116_v32, %v115_v31 }
  0x25   :  { %v94_v29 = vadd.f32 %v93_v22, %v88_v25 }
  0x27   :  { %v100_v33 = vadd.f32 %v99_v26, %v94_v29 }
  0x29   :  { %v106_v35 = vadd.f32 %v105_v30, %v100_v33 }
  0x2b   :  { %v112_v37 = vadd.f32 %v111_v34, %v106_v35 }
  0x2d   :  { %v118_v40 = vadd.f32 %v117_v36, %v112_v37 }
  0x2f   :  { %v120_v42 = vadd.f32 %v119_v38, %v118_v40 }
  0x31   :  { %v122_v43 = vadd.f32 %v121_v41, %v120_v42 }
  0x33   :  { %127 = vst.msk [vmem:[#allocation9] sm:$0x3] %vm125_vm0, %v122_v43 }
  0x34   :  { %138 = dma.vmem_to_hbm [thread:$0]  %s134_s15, 32, %s136_s18, [#allocation4]  }
  0x35   :  { %252 = dma.done.wait [#allocation4], 32  }
  0x36   :  { %253 = vsyncadd [#allocation4], 4294967264 }
  0x37   :  { %143 = vsyncpa [#allocation3], 1 }
  0x38   :  { %144 = vsyncpa [#allocation8], 1 }
  0x39   :  { %145 = vsyncpa [#allocation4], 1 }
  0x3a   :  { %146 = vsyncpa [#allocation5], 1 }

</bundles_post_ra>
